<compile_context>
chip_gen: v6e
topology: v6e:2x2x1
jax: 0.10.0
libtpu: 0.0.40
codegen_flags: <defaults>
</compile_context>

<pallas_src>
import math

import jax
import jax.numpy as jnp
from jax.experimental import pallas as pl
from jax.experimental.pallas import tpu as pltpu


def _round_up(x, m):
    return ((x + m - 1) // m) * m


def _patch_embed_kernel(x_ref, w_ref, b_ref, o_ref):
    # x_ref: (TM, Kp) bf16 patches tile; w_ref: (Kp, Eout) bf16 (resident);
    # b_ref: (1, Eout) f32 (resident); o_ref: (TM, Eout) out_dtype.
    # MXU matmul with f32 accumulation; bias add in f32; cast at the end.
    acc = jnp.dot(x_ref[...], w_ref[...], preferred_element_type=jnp.float32)
    o_ref[...] = (acc + b_ref[...]).astype(o_ref.dtype)


def prepare_patch_embed_params(weight, bias, *, compute_dtype=jnp.bfloat16):
    """One-time Conv3d parameter prep (hoist out of the per-forward hot path).

    weight: (E, C, kt, kh, kw); bias: (E,)  ->  (w2d (Kp, Eout) bf16,
                                                 b2d (1, Eout) f32,
                                                 (E, K, Kp, Eout))
    """
    E = weight.shape[0]
    K = math.prod(weight.shape[1:])
    Kp = _round_up(K, 128)                      # lane-dense streamed tile
    Eout = _round_up(max(E, 128), 128)          # lane-dense output / MXU columns
    w2d = weight.reshape(E, K).T.astype(compute_dtype)          # (K, E)
    if (Kp, Eout) != (K, E):
        w2d = jnp.pad(w2d, ((0, Kp - K), (0, Eout - E)))
    b2d = bias.astype(jnp.float32).reshape(1, E)
    if Eout != E:
        b2d = jnp.pad(b2d, ((0, 0), (0, Eout - E)))
    return w2d, b2d, (E, K, Kp, Eout)


def _choose_block_m(M, block_m, Kp, Eout, in_bytes, out_bytes):
    """Pick the M tile.

    Prefers a TM that (a) fits a conservative VMEM budget double-buffered,
    (b) divides M exactly (no ragged last block, no jnp.pad of the streamed
    operand), (c) is a multiple of 16 (bf16 sublane packing), and (d) leaves
    at least 2 grid steps when M is big enough so the "parallel" grid axis can
    feed both TensorCores on v7x.
    """
    # VMEM budget: double-buffered streamed input + output tile, plus resident
    # (but conservatively double-buffered) weight/bias.  40 MiB is safely under
    # v7x's 64 MiB physical VMEM; v5e/v6e have 128 MiB so this never binds there.
    VMEM_BUDGET = 40 << 20
    fixed = 2 * (Kp * Eout * in_bytes + Eout * 4)
    per_row = 2 * (Kp * in_bytes + Eout * out_bytes)
    cap = max(16, min(block_m, (VMEM_BUDGET - fixed) // per_row))
    cap = min(cap, M)
    if M >= 512:                                # worth splitting across 2 TCs (v7x)
        cap = min(cap, max(16, (M // 2 // 16) * 16))
    for align in (16, 8):
        tm = (cap // align) * align
        while tm >= align:
            if M % tm == 0:
                return tm
            tm -= align
    # Fallback: aligned tile, rely on Pallas's handling of the ragged last block
    # (padded reads, masked writes).  Rows past M are never read back.
    return min(_round_up(M, 16), _round_up(cap, 16))


def patch_embed_swin(x, weight, bias, *, tubelet_size, patch_size,
                     block_m=1024, compute_dtype=jnp.bfloat16, prepared=None):
    """x: (B, C, T, H, W); weight: (E, C, kt, kh, kw); bias: (E,) -> (B, N, E).

    Equivalent to PatchEmbedSwin.forward: proj(x).flatten(2).transpose(1, 2).
    Pass `prepared=prepare_patch_embed_params(weight, bias)` to hoist the
    (tiny) weight reshape/pad/cast out of the hot path.
    """
    B, C, T, H, W = x.shape
    kt, kh, kw = tubelet_size, patch_size[0], patch_size[1]
    Tp, Hp, Wp = T // kt, H // kh, W // kw
    N = Tp * Hp * Wp
    M = B * N
    out_dtype = x.dtype

    if prepared is None:
        prepared = prepare_patch_embed_params(weight, bias, compute_dtype=compute_dtype)
    w2d, b2d, (E, K, Kp, Eout) = prepared

    # ---- layout glue: non-overlapping patches in (tp, hp, wp) order ----
    # Cast BEFORE the transpose so any materialized intermediate is bf16 (half the
    # bytes of f32); allow_input_fusion[0]=True lets XLA fuse the transpose/reshape
    # into the pallas input stream when it can.
    # Flatten order (C, kt, kh, kw) matches PyTorch Conv3d weight layout.
    xp = x.astype(compute_dtype).reshape(B, C, Tp, kt, Hp, kh, Wp, kw)
    xp = jnp.transpose(xp, (0, 2, 4, 6, 1, 3, 5, 7))           # (B,Tp,Hp,Wp,C,kt,kh,kw)
    patches = xp.reshape(M, K)
    if Kp != K:
        patches = jnp.pad(patches, ((0, 0), (0, Kp - K)))      # lane-dense K (rare)

    # ---- M-tiled grid (K kept un-tiled -> no accumulator scratch) ----
    in_bytes = jnp.dtype(compute_dtype).itemsize
    out_bytes = jnp.dtype(out_dtype).itemsize
    TM = _choose_block_m(M, block_m, Kp, Eout, in_bytes, out_bytes)
    grid_m = pl.cdiv(M, TM)

    # Explicit VMEM limit so bigger tiles don't trip v5e's 16 MiB scoped default;
    # capped at 64 MiB for v7x's smaller VMEM (v5e/v6e have 128 MiB physical).
    vmem_need = (2 * TM * Kp * in_bytes + 2 * TM * Eout * out_bytes
                 + 2 * (Kp * Eout * in_bytes + Eout * 4))
    vmem_limit = int(min(64 << 20, max(2 * vmem_need, 32 << 20)))

    cost = pl.CostEstimate(
        flops=2 * M * Kp * Eout,
        transcendentals=0,
        bytes_accessed=(M * Kp * in_bytes + Kp * Eout * in_bytes + Eout * 4
                        + M * Eout * out_bytes),
    )

    out2d = pl.pallas_call(
        _patch_embed_kernel,
        out_shape=jax.ShapeDtypeStruct((M, Eout), out_dtype),
        grid=(grid_m,),
        in_specs=[
            pl.BlockSpec((TM, Kp), lambda i: (i, 0)),      # streamed patches tile
            pl.BlockSpec((Kp, Eout), lambda i: (0, 0)),    # weight resident across grid
            pl.BlockSpec((1, Eout), lambda i: (0, 0)),     # bias resident across grid
        ],
        out_specs=pl.BlockSpec((TM, Eout), lambda i: (i, 0)),
        compiler_params=pltpu.CompilerParams(
            dimension_semantics=("parallel",),             # shard M tiles across TCs (v7x)
            allow_input_fusion=[True, False, False],       # fuse patch transpose into input 0
            vmem_limit_bytes=vmem_limit,
        ),
        cost_estimate=cost,
    )(patches, w2d, b2d)

    # No row slice needed (out_shape is exactly M rows); column slice only when E
    # had to be padded up to a lane-dense multiple of 128.
    if Eout != E:
        out2d = out2d[:, :E]
    return out2d.reshape(B, N, E)


if __name__ == "__main__":
    # Small-shape config consistent with the module:
    #   img_size=16, patch_size=8, in_chans=4, embed_dim=32, num_frames=4, tubelet_size=2
    B, C, T, H, W = 2, 4, 4, 16, 16
    patch = (8, 8)
    tubelet = 2
    embed_dim = 32

    key = jax.random.PRNGKey(0)
    kx, kw_, kb = jax.random.split(key, 3)

    x = jax.random.normal(kx, (B, C, T, H, W), dtype=jnp.float32)
    # Conv3d weight: (embed_dim, in_chans, kt, kh, kw); deterministic trunc-normal-ish init.
    weight = 0.02 * jax.random.truncated_normal(
        kw_, -2.0, 2.0, (embed_dim, C, tubelet, patch[0], patch[1]), dtype=jnp.float32
    )
    bias = 0.01 * jax.random.normal(kb, (embed_dim,), dtype=jnp.float32)

    # One-time param prep (hoisted out of the hot path), then the forward.
    prepared = prepare_patch_embed_params(weight, bias)
    out = patch_embed_swin(x, weight, bias, tubelet_size=tubelet, patch_size=patch,
                           prepared=prepared)
    out = jax.block_until_ready(out)

    # Reference: kernel==stride Conv3d as a patch matmul, with the same bf16 rounding
    # of the streamed operands as the kernel uses (accumulation stays f32).
    Tp, Hp, Wp = T // tubelet, H // patch[0], W // patch[1]
    xp = x.reshape(B, C, Tp, tubelet, Hp, patch[0], Wp, patch[1])
    xp = jnp.transpose(xp, (0, 2, 4, 6, 1, 3, 5, 7)).reshape(B, Tp * Hp * Wp, -1)
    xq = xp.astype(jnp.bfloat16).astype(jnp.float32)
    wq = weight.reshape(embed_dim, -1).astype(jnp.bfloat16).astype(jnp.float32)
    ref = jnp.dot(xq, wq.T, precision=jax.lax.Precision.HIGHEST) + bias

    assert out.shape == (B, Tp * Hp * Wp, embed_dim)
    assert jnp.allclose(out, ref, atol=1e-3, rtol=1e-3), float(jnp.max(jnp.abs(out - ref)))

    print("KERNEL_OK")
</pallas_src>

<mosaic_0001>
module attributes {stable_mosaic.version = 11 : i64} {
  func.func @_patch_embed_kernel(%arg0: i32, %arg1: memref<16x512xbf16, #tpu.memory_space<vmem>>, %arg2: memref<512x128xbf16, #tpu.memory_space<vmem>>, %arg3: memref<1x128xf32, #tpu.memory_space<vmem>>, %arg4: memref<16x128xf32, #tpu.memory_space<vmem>>) attributes {dimension_semantics = [#tpu.dimension_semantics<parallel>], iteration_bounds = array<i64: 1>, scalar_prefetch = 0 : i64, scratch_operands = 0 : i64, tpu.core_type = #tpu.core_type<tc>, window_params = [{transform_indices = @transform_0, window_bounds = array<i64: 16, 512>}, {pipeline_mode = #tpu.pipeline_mode<synchronous>, transform_indices = @transform_1, window_bounds = array<i64: 512, 128>}, {pipeline_mode = #tpu.pipeline_mode<synchronous>, transform_indices = @transform_2, window_bounds = array<i64: 1, 128>}, {transform_indices = @transform_3, window_bounds = array<i64: 16, 128>}]} {
    %c0 = arith.constant 0 : index
    %c0_0 = arith.constant 0 : index
    %0 = vector.load %arg1[%c0, %c0_0] : memref<16x512xbf16, #tpu.memory_space<vmem>>, vector<16x512xbf16>
    %c0_1 = arith.constant 0 : index
    %c0_2 = arith.constant 0 : index
    %1 = vector.load %arg2[%c0_1, %c0_2] : memref<512x128xbf16, #tpu.memory_space<vmem>>, vector<512x128xbf16>
    %cst = arith.constant dense<0.000000e+00> : vector<16x128xf32>
    %2 = tpu.matmul %0, %1, %cst {dimension_numbers = #tpu.dot_dimension_numbers<[1], [0], [0], [1], [0, 0, 1, 1], [], []>} : vector<16x512xbf16>, vector<512x128xbf16>, vector<16x128xf32> -> vector<16x128xf32>
    %c0_3 = arith.constant 0 : index
    %c0_4 = arith.constant 0 : index
    %3 = vector.load %arg3[%c0_3, %c0_4] : memref<1x128xf32, #tpu.memory_space<vmem>>, vector<1x128xf32>
    %4 = vector.broadcast %3 : vector<1x128xf32> to vector<16x128xf32>
    %5 = arith.addf %2, %4 : vector<16x128xf32>
    %c0_5 = arith.constant 0 : index
    %c0_6 = arith.constant 0 : index
    %6 = vector.load %arg4[%c0_5, %c0_6] : memref<16x128xf32, #tpu.memory_space<vmem>>, vector<16x128xf32>
    tpu.vector_store %arg4[%c0_5, %c0_6], %5 {strides = array<i32>} : memref<16x128xf32, #tpu.memory_space<vmem>>, vector<16x128xf32>,
    return
  }
  func.func @transform_0(%arg0: i32) -> (i32, i32) {
    %c0_i32 = arith.constant 0 : i32
    %c0_i32_0 = arith.constant 0 : i32
    return %arg0, %c0_i32 : i32, i32
  }
  func.func @transform_1(%arg0: i32) -> (i32, i32) {
    %c0_i32 = arith.constant 0 : i32
    %c0_i32_0 = arith.constant 0 : i32
    %c0_i32_1 = arith.constant 0 : i32
    return %c0_i32, %c0_i32_0 : i32, i32
  }
  func.func @transform_2(%arg0: i32) -> (i32, i32) {
    %c0_i32 = arith.constant 0 : i32
    %c0_i32_0 = arith.constant 0 : i32
    %c0_i32_1 = arith.constant 0 : i32
    return %c0_i32, %c0_i32_0 : i32, i32
  }
  func.func @transform_3(%arg0: i32) -> (i32, i32) {
    %c0_i32 = arith.constant 0 : i32
    %c0_i32_0 = arith.constant 0 : i32
    return %arg0, %c0_i32 : i32, i32
  }
}

</mosaic_0001>

<bundles_post_ra>
// kernel: tpu_custom_call.1
= control target key start
LH: loop header
LB: loop body
LE: loop exit
PB: predicated region body
PF: predicated region fallthrough
CT: control target
= control target key end

     0   :  { %8 = vsyncpa [#allocation3], 0  ;;  %s668_s0 = inlined_call_operand.hbm [shape: bf16[16,512], index: 0, kind: input, shape index: {}]   ;;  %s669_s1 = inlined_call_operand.hbm [shape: bf16[512,128], index: 1, kind: input, shape index: {}]   ;;  %s670_s2 = inlined_call_operand.vmem [shape: f32[1,128], index: 2, kind: input, shape index: {}]   ;;  %s671_s3 = inlined_call_operand.hbm [shape: f32[16,128], index: 3, kind: output, shape index: {}]  }
   0x1   :  { %9 = vsyncpa [#allocation6], 0 }
   0x2   :  { %10 = vsyncpa [#allocation4], 0  ;;  %s627_s12 = smov [#allocation2]  }
   0x3   :  { %s16_s13 = sshll.u32 %s627_s12, 4  ;;  %s17_s13 = int_to_ptr.vmem [resolvable:$true] %s16_s13 }
   0x4   :  { %s569_s14 = scalar_lea.vmem %s17_s13, 512  ;;  %p574_p1 = scmp.lt.s32.totalorder %s17_s13, %s17_s13 }
   0x5   :  { %p570_p0 = scmp.ne.s32.totalorder %s17_s13, %s569_s14  ;;  %p575_p2 = scmp.lt.s32.totalorder %s569_s14, %s569_s14 }
   0x7   :  { %p576_p3 = por %p575_p2, %p574_p1 }
   0x9   :  { %p577_p4 = pnand %p576_p3, %p570_p0 }
   0xb   :  { %580 = shalt.err (!%p577_p4)
}
   0xc   :  { %s628_s15 = smov 256   ;;  %s629_s16 = smov 16  }
   0xd   :  { %22 = dma.hbm_to_vmem [thread:$0]  %s668_s0, 512, %s17_s13, [#allocation3], %s628_s15, %s628_s15, %s629_s16  }
   0xe   :  { %s630_s19 = smov [#allocation5]  }
   0xf   :  { %s28_s20 = sshll.u32 %s630_s19, 4  ;;  %s29_s20 = int_to_ptr.vmem [resolvable:$true] %s28_s20 }
  0x10   :  { %s589_s21 = scalar_lea.vmem %s29_s20, 4096  ;;  %p594_p6 = scmp.lt.s32.totalorder %s29_s20, %s29_s20 }
  0x11   :  { %p590_p5 = scmp.ne.s32.totalorder %s29_s20, %s589_s21  ;;  %p595_p7 = scmp.lt.s32.totalorder %s589_s21, %s589_s21 }
  0x13   :  { %p596_p8 = por %p595_p7, %p594_p6 }
  0x15   :  { %p597_p9 = pnand %p596_p8, %p590_p5 }
  0x17   :  { %600 = shalt.err (!%p597_p9)
}
  0x18   :  { %s631_s22 = smov 64   ;;  %s632_s23 = smov 4  }
  0x19   :  { %34 = dma.hbm_to_vmem [thread:$0]  %s669_s1, 4096, %s29_s20, [#allocation6], %s631_s22, %s631_s22, %s632_s23  }
  0x1a   :  { %621 = dma.done.wait [#allocation3], 512  }
  0x1b   :  { %622 = vsyncadd [#allocation3], 4294966784 }
  0x1c   :  { %623 = dma.done.wait [#allocation6], 4096  }
  0x1d   :  { %624 = vsyncadd [#allocation6], 4294963200  ;;  %v523_v0 = vld [vmem:[#allocation5 + $0x78] sm:$0xff]   ;;  %v527_v4 = vld [vmem:[#allocation5 + $0x70] sm:$0xff]   ;;  %s633_s26 = smov [#allocation7]  }
  0x1e   :  { %v524_v1 = vld [vmem:[#allocation5 + $0xf8] sm:$0xff]   ;;  %470 = vmatprep.subr.bf16.mxu0 %v523_v0  ;;  %v528_v5 = vld [vmem:[#allocation5 + $0xf0] sm:$0xff]   ;;  %v531_v8 = vld [vmem:[#allocation5 + $0x68] sm:$0xff]   ;;  %s420_s27 = sshll.u32 %s633_s26, 4  ;;  %s421_s27 = int_to_ptr.vmem [resolvable:$true] %s420_s27 }
  0x1f   :  { %v525_v2 = vld [vmem:[#allocation5 + $0x38] sm:$0xff]   ;;  %492 = vmatprep.subr.bf16.mxu1 %v524_v1  ;;  %v529_v6 = vld [vmem:[#allocation5 + $0x30] sm:$0xff]   ;;  %v532_v9 = vld [vmem:[#allocation5 + $0xe8] sm:$0xff]   ;;  %p606_p11 = scmp.lt.s32.totalorder %s421_s27, %s421_s27 }
  0x20   :  { %v526_v3 = vld [vmem:[#allocation5 + $0xb8] sm:$0xff]   ;;  %471 = vmatpush3.bf16.msra.mxu0 %v525_v2  ;;  %v530_v7 = vld [vmem:[#allocation5 + $0xb0] sm:$0xff]   ;;  %v533_v10 = vld [vmem:[#allocation5 + $0x28] sm:$0xff]  }
  0x21   :  { %493 = vmatpush3.bf16.msra.mxu1 %v526_v3  ;;  %472 = vmatprep.subr.bf16.mxu0 %v527_v4  ;;  %v534_v11 = vld [vmem:[#allocation5 + $0xa8] sm:$0xff]   ;;  %v535_v12 = vld [vmem:[#allocation5 + $0x60] sm:$0xff]   ;;  %v539_v16 = vld [vmem:[#allocation5 + $0x58] sm:$0xff]  }
  0x22   :  { %494 = vmatprep.subr.bf16.mxu1 %v528_v5  ;;  %v536_v13 = vld [vmem:[#allocation5 + $0xe0] sm:$0xff]   ;;  %v540_v17 = vld [vmem:[#allocation5 + $0xd8] sm:$0xff]   ;;  %v543_v20 = vld [vmem:[#allocation5 + $0x50] sm:$0xff]  }
  0x23   :  { %v537_v14 = vld [vmem:[#allocation5 + $0x20] sm:$0xff]   ;;  %v541_v18 = vld [vmem:[#allocation5 + $0x18] sm:$0xff]   ;;  %v544_v21 = vld [vmem:[#allocation5 + $0xd0] sm:$0xff]  }
  0x24   :  { %473 = vmatpush3.bf16.msra.mxu0 %v529_v6  ;;  %v538_v15 = vld [vmem:[#allocation5 + $0xa0] sm:$0xff]   ;;  %v542_v19 = vld [vmem:[#allocation5 + $0x98] sm:$0xff]   ;;  %v545_v22 = vld [vmem:[#allocation5 + $0x10] sm:$0xff]  }
  0x25   :  { %495 = vmatpush3.bf16.msra.mxu1 %v530_v7  ;;  %474 = vmatprep.subr.bf16.mxu0 %v531_v8  ;;  %v546_v23 = vld [vmem:[#allocation5 + $0x90] sm:$0xff]   ;;  %v547_v24 = vld [vmem:[#allocation5 + $0x48] sm:$0xff]   ;;  %v551_v28 = vld [vmem:[#allocation5 + $0x40] sm:$0xff]  }
  0x26   :  { %496 = vmatprep.subr.bf16.mxu1 %v532_v9  ;;  %v548_v25 = vld [vmem:[#allocation5 + $0xc8] sm:$0xff]   ;;  %v552_v29 = vld [vmem:[#allocation5 + $0xc0] sm:$0xff]  }
  0x27   :  { %v549_v26 = vld [vmem:[#allocation5 + $0x8] sm:$0xff]   ;;  %v553_v30 = vld [vmem:[#allocation5] sm:$0xff]  }
  0x28   :  { %475 = vmatpush3.bf16.msra.mxu0 %v533_v10  ;;  %v550_v27 = vld [vmem:[#allocation5 + $0x88] sm:$0xff]   ;;  %v554_v31 = vld [vmem:[#allocation5 + $0x80] sm:$0xff]  }
  0x29   :  { %497 = vmatpush3.bf16.msra.mxu1 %v534_v11  ;;  %476 = vmatprep.subr.bf16.mxu0 %v535_v12  ;;  %v555_v32 = vld [vmem:[#allocation2] ss:$16 sps:$4 sm:$0xff]   ;;  %v557_v33 = vld [vmem:[#allocation2 + $0x4] ss:$16 sps:$4 sm:$0xff]   ;;  %v558_v34 = vld [vmem:[#allocation2 + $0x8] ss:$16 sps:$4 sm:$0xff]  }
  0x2a   :  { %498 = vmatprep.subr.bf16.mxu1 %v536_v13  ;;  %v560_v35 = vld [vmem:[#allocation2 + $0xc] ss:$16 sps:$4 sm:$0xff]   ;;  %363 = vmatprep.mubr.bf16.mxu0 %v557_v33  ;;  %v433_v38 = vld [vmem:[%s670_s2] ss:$0 sm:$0xff]  ;;  %s601_s2 = scalar_lea.vmem %s421_s27, 256 }
  0x2b   :  { %404 = vmatprep.mubr.bf16.mxu1 %v560_v35  ;;  %p602_p10 = scmp.ne.s32.totalorder %s421_s27, %s601_s2  ;;  %p607_p12 = scmp.lt.s32.totalorder %s601_s2, %s601_s2 }
  0x2c   :  { %477 = vmatpush3.bf16.msra.mxu0 %v537_v14 }
  0x2d   :  { %499 = vmatpush3.bf16.msra.mxu1 %v538_v15  ;;  %478 = vmatprep.subr.bf16.mxu0 %v539_v16  ;;  %p608_p13 = por %p607_p12, %p606_p11 }
  0x2e   :  { %500 = vmatprep.subr.bf16.mxu1 %v540_v17 }
  0x2f   :  { %p609_p0 = pnand %p608_p13, %p602_p10 }
  0x30   :  { %479 = vmatpush3.bf16.msra.mxu0 %v541_v18 }
  0x31   :  { %501 = vmatpush3.bf16.msra.mxu1 %v542_v19  ;;  %480 = vmatprep.subr.bf16.mxu0 %v543_v20 }
  0x32   :  { %502 = vmatprep.subr.bf16.mxu1 %v544_v21 }
  0x34   :  { %481 = vmatpush3.bf16.msra.mxu0 %v545_v22 }
  0x35   :  { %503 = vmatpush3.bf16.msra.mxu1 %v546_v23  ;;  %482 = vmatprep.subr.bf16.mxu0 %v547_v24 }
  0x36   :  { %504 = vmatprep.subr.bf16.mxu1 %v548_v25 }
  0x38   :  { %483 = vmatpush3.bf16.msra.mxu0 %v549_v26 }
  0x39   :  { %505 = vmatpush3.bf16.msra.mxu1 %v550_v27  ;;  %484 = vmatprep.subr.bf16.mxu0 %v551_v28 }
  0x3a   :  { %506 = vmatprep.subr.bf16.mxu1 %v552_v29 }
  0x3c   :  { %485 = vmatpush3.bf16.msra.mxu0 %v553_v30 }
  0x3d   :  { %507 = vmatpush3.bf16.msra.mxu1 %v554_v31 }
  0x3f   :  { %364 = vmatmul.mubr.bf16.vlgmr.msra.gmra.mxu0 %v555_v32 }
  0x40   :  { %405 = vmatmul.mubr.bf16.vlgmr.msra.gmra.mxu1 %v558_v34 }
  0xff   :  { %v486_v36 = vpop.f32.mrf.mxu0 }
 0x100   :  { %v508_v37 = vpop.f32.mrf.mxu1 }
 0x101   :  { %v487_v39 = vpop.f32.mrf.mxu0 }
 0x102   :  { %v488_v40 = vadd.f32 %v487_v39, %v486_v36  ;;  %v509_v41 = vpop.f32.mrf.mxu1 }
 0x103   :  { %v489_v42 = vpop.f32.mrf.mxu0  ;;  %v510_v44 = vadd.f32 %v509_v41, %v508_v37 }
 0x104   :  { %v366_v43 = vadd.f32 %v488_v40, %v433_v38  ;;  %v511_v45 = vpop.f32.mrf.mxu1 }
 0x105   :  { %v490_v46 = vpop.f32.mrf.mxu0 }
 0x106   :  { %v407_v47 = vadd.f32 %v510_v44, %v366_v43  ;;  %v491_v48 = vadd.f32 %v490_v46, %v489_v42  ;;  %v512_v49 = vpop.f32.mrf.mxu1 }
 0x107   :  { %v513_v51 = vadd.f32 %v512_v49, %v511_v45 }
 0x108   :  { %413 = vst [vmem:[#allocation7] sm:$0xff] %v407_v47  ;;  %v369_v50 = vadd.f32 %v491_v48, %v433_v38 }
 0x10a   :  { %v410_v52 = vadd.f32 %v513_v51, %v369_v50 }
 0x10c   :  { %414 = vst [vmem:[#allocation7 + $0x8] sm:$0xff] %v410_v52 }
 0x10d   :  { %612 = shalt.err (!%p609_p0)
}
 0x10e   :  { %s634_s28 = smov 128   ;;  %s635_s29 = smov 8  }
 0x10f   :  { %426 = dma.vmem_to_hbm [thread:$0]  %s421_s27, 256, %s671_s3, [#allocation4], %s634_s28, %s634_s28, %s635_s29  }
 0x110   :  { %625 = dma.done.wait [#allocation4], 256  }
 0x111   :  { %626 = vsyncadd [#allocation4], 4294967040 }
 0x112   :  { %430 = vsyncpa [#allocation3], 1 }
 0x113   :  { %431 = vsyncpa [#allocation6], 1 }
 0x114   :  { %432 = vsyncpa [#allocation4], 1 }

</bundles_post_ra>
